<compile_context>
chip_gen: v6e
topology: v6e:2x2x1
jax: 0.10.0
libtpu: 0.0.40
codegen_flags: <defaults>
</compile_context>

<pallas_src>
import functools

import jax
import jax.numpy as jnp
from jax.experimental import pallas as pl
from jax.experimental.pallas import tpu as pltpu


def _nonneg_kernel(bound, pedestal, x_ref, o_ref):
    # Compute in f32 regardless of input dtype (pedestal = 2^-36 underflows in
    # bf16/fp16); cast back at the store.  A couple of VPU ops, free under the
    # HBM roofline.
    x = x_ref[...].astype(jnp.float32)
    y = jnp.maximum(x, jnp.float32(bound))        # LowerBound forward
    o_ref[...] = (y * y - jnp.float32(pedestal)).astype(o_ref.dtype)


def nonnegative_parametrizer_forward(
        x,
        minimum=0.0,
        reparam_offset=2.0 ** -18,
        *,
        min_pallas_elems=256 * 1024,
        alias_input=False,
):
    """Pallas TPU implementation of NonNegativeParametrizer.forward.

    Routing:
      * n < min_pallas_elems or n % 128 != 0  -> fused pure-jnp expression
        (no pad/slice copies, no launch overhead).
      * otherwise                             -> lane-dense (R, C) Pallas kernel.
    """
    minimum = float(minimum)
    reparam_offset = float(reparam_offset)
    pedestal = reparam_offset ** 2
    bound = (minimum + pedestal) ** 0.5

    orig_shape = x.shape
    dtype = x.dtype
    n = x.size

    def _jnp_path(x):
        xf = x.astype(jnp.float32)
        y = jnp.maximum(xf, jnp.float32(bound))
        return (y * y - jnp.float32(pedestal)).astype(dtype)

    # ---- small / ragged fallback (typical GDN beta/gamma tensors) ----
    if n == 0 or n < min_pallas_elems or (n % 128) != 0:
        return _jnp_path(x)

    # ---- zero-copy lane-dense 2-D view: (R, C), C a multiple of 128 ----
    C = next(c for c in (1024, 512, 256, 128) if n % c == 0)
    R = n // C
    x2d = x.reshape(R, C)                       # row-major reshape, no copy

    # ---- block size: ~4 MiB per block; >=2 blocks when R >= 16 (v7x dual-TC) ----
    TM = (1 << 20) // C                         # 1M elements per block (mult. of 8)
    if R >= 16:
        TM = min(TM, ((pl.cdiv(R, 2) + 7) // 8) * 8)   # at least 2 grid blocks
    if TM >= R:
        TM = R                                  # small input: one full-extent block
    grid = (pl.cdiv(R, TM),)                    # partial last block handled by Pallas

    itemsize = jnp.dtype(dtype).itemsize
    cost = pl.CostEstimate(
        flops=3 * n,                            # max, mul, sub per element
        transcendentals=0,
        bytes_accessed=2 * n * itemsize,        # one read + one write pass
    )

    extra_kwargs = {}
    if alias_input:
        # Only safe if the caller donates x (shape/dtype of x2d == output).
        extra_kwargs["input_output_aliases"] = {0: 0}

    out2d = pl.pallas_call(
        functools.partial(_nonneg_kernel, bound, pedestal),
        out_shape=jax.ShapeDtypeStruct((R, C), dtype),
        grid_spec=pltpu.PrefetchScalarGridSpec(
            num_scalar_prefetch=0,
            grid=grid,
            in_specs=[pl.BlockSpec((TM, C), lambda i: (i, 0))],
            out_specs=pl.BlockSpec((TM, C), lambda i: (i, 0)),
        ),
        compiler_params=pltpu.CompilerParams(
            dimension_semantics=("parallel",),
            vmem_limit_bytes=32 * 1024 * 1024,  # raises v5e's 16 MiB default; safe on v7x
        ),
        cost_estimate=cost,
        **extra_kwargs,
    )(x2d)

    return out2d.reshape(orig_shape)


# ---------------- pure-JAX reference for validation ----------------
def nonnegative_parametrizer_ref(x, minimum=0.0, reparam_offset=2.0 ** -18):
    pedestal = float(reparam_offset) ** 2
    bound = (float(minimum) + pedestal) ** 0.5
    xf = x.astype(jnp.float32)
    y = jnp.maximum(xf, jnp.float32(bound))
    return (y * y - jnp.float32(pedestal)).astype(x.dtype)


if __name__ == "__main__":
    key = jax.random.PRNGKey(0)
    k1, k2, k3, k4 = jax.random.split(key, 4)

    # 1) Small NCHW tensor, forced through the Pallas path (n=2048 -> C=1024, R=2).
    x1 = jax.random.normal(k1, (2, 4, 16, 16), jnp.float32)
    out1 = jax.block_until_ready(
        nonnegative_parametrizer_forward(x1, min_pallas_elems=0))
    ref1 = nonnegative_parametrizer_ref(x1)
    assert out1.shape == x1.shape and out1.dtype == x1.dtype
    assert jnp.allclose(out1, ref1, atol=1e-6, rtol=1e-6), float(
        jnp.max(jnp.abs(out1 - ref1)))

    # 2) Multi-block grid with a partial last block (n=40960 -> R=40, TM=24, grid=(2,)).
    x2 = jax.random.normal(k2, (10, 4, 32, 32), jnp.float32)
    out2 = jax.block_until_ready(
        nonnegative_parametrizer_forward(x2, minimum=0.25, min_pallas_elems=0))
    ref2 = nonnegative_parametrizer_ref(x2, minimum=0.25)
    assert jnp.allclose(out2, ref2, atol=1e-6, rtol=1e-6), float(
        jnp.max(jnp.abs(out2 - ref2)))

    # 3) Ragged size (105 elements) -> fused jnp fallback, no pad/slice copies.
    x3 = jax.random.normal(k3, (3, 5, 7), jnp.float32)
    out3 = jax.block_until_ready(nonnegative_parametrizer_forward(x3))
    ref3 = nonnegative_parametrizer_ref(x3)
    assert jnp.allclose(out3, ref3, atol=1e-6, rtol=1e-6), float(
        jnp.max(jnp.abs(out3 - ref3)))

    # 4) bf16 input through the Pallas path: f32 internal compute, bf16 output.
    x4 = jax.random.normal(k4, (4, 8, 8, 8), jnp.bfloat16)
    out4 = jax.block_until_ready(
        nonnegative_parametrizer_forward(x4, min_pallas_elems=0))
    ref4 = nonnegative_parametrizer_ref(x4)
    assert out4.dtype == jnp.bfloat16
    assert jnp.allclose(out4.astype(jnp.float32), ref4.astype(jnp.float32),
                        atol=1e-2, rtol=1e-2)

    # TODO(synk): LowerBound's custom straight-through backward is a
    # training-time autograd rule; only the forward pass is implemented here.
    print("KERNEL_OK")
</pallas_src>

<mosaic_0001>
module attributes {stable_mosaic.version = 11 : i64} {
  func.func @_nonneg_kernel(%arg0: i32, %arg1: memref<2x1024xf32, #tpu.memory_space<vmem>>, %arg2: memref<2x1024xf32, #tpu.memory_space<vmem>>) attributes {dimension_semantics = [#tpu.dimension_semantics<parallel>], iteration_bounds = array<i64: 1>, scalar_prefetch = 0 : i64, scratch_operands = 0 : i64, tpu.core_type = #tpu.core_type<tc>, window_params = [{transform_indices = @transform_0, window_bounds = array<i64: 2, 1024>}, {transform_indices = @transform_1, window_bounds = array<i64: 2, 1024>}]} {
    %c0 = arith.constant 0 : index
    %c0_0 = arith.constant 0 : index
    %0 = vector.load %arg1[%c0, %c0_0] : memref<2x1024xf32, #tpu.memory_space<vmem>>, vector<2x1024xf32>
    %cst = arith.constant 3.81469727E-6 : f32
    %1 = vector.broadcast %cst : f32 to vector<2x1024xf32>
    %2 = arith.maximumf %0, %1 : vector<2x1024xf32>
    %3 = arith.mulf %2, %2 : vector<2x1024xf32>
    %cst_1 = arith.constant 1.45519152E-11 : f32
    %4 = vector.broadcast %cst_1 : f32 to vector<2x1024xf32>
    %5 = arith.subf %3, %4 : vector<2x1024xf32>
    %c0_2 = arith.constant 0 : index
    %c0_3 = arith.constant 0 : index
    %6 = vector.load %arg2[%c0_2, %c0_3] : memref<2x1024xf32, #tpu.memory_space<vmem>>, vector<2x1024xf32>
    tpu.vector_store %arg2[%c0_2, %c0_3], %5 {strides = array<i32>} : memref<2x1024xf32, #tpu.memory_space<vmem>>, vector<2x1024xf32>,
    return
  }
  func.func @transform_0(%arg0: i32) -> (i32, i32) {
    %c0_i32 = arith.constant 0 : i32
    %c0_i32_0 = arith.constant 0 : i32
    return %arg0, %c0_i32 : i32, i32
  }
  func.func @transform_1(%arg0: i32) -> (i32, i32) {
    %c0_i32 = arith.constant 0 : i32
    %c0_i32_0 = arith.constant 0 : i32
    return %arg0, %c0_i32 : i32, i32
  }
}

</mosaic_0001>

<bundles_post_ra>
// kernel: tpu_custom_call.1
= control target key start
LH: loop header
LB: loop body
LE: loop exit
PB: predicated region body
PF: predicated region fallthrough
CT: control target
= control target key end

     0   :  { %6 = vsyncpa [#allocation3], 0  ;;  %s112_s0 = inlined_call_operand.hbm [shape: f32[2,1024], index: 0, kind: input, shape index: {}]   ;;  %s113_s1 = inlined_call_operand.hbm [shape: f32[2,1024], index: 1, kind: output, shape index: {}]  }
   0x1   :  { %7 = vsyncpa [#allocation4], 0  ;;  %s94_s6 = smov [#allocation2]  }
   0x2   :  { %s14_s7 = sshll.u32 %s94_s6, 4  ;;  %s15_s7 = int_to_ptr.vmem [resolvable:$true] %s14_s7 }
   0x3   :  { %s58_s8 = scalar_lea.vmem %s15_s7, 256  ;;  %p63_p1 = scmp.lt.s32.totalorder %s15_s7, %s15_s7 }
   0x4   :  { %p59_p0 = scmp.ne.s32.totalorder %s15_s7, %s58_s8  ;;  %p64_p2 = scmp.lt.s32.totalorder %s58_s8, %s58_s8 }
   0x6   :  { %p65_p3 = por %p64_p2, %p63_p1 }
   0x8   :  { %p66_p4 = pnand %p65_p3, %p59_p0 }
   0xa   :  { %69 = shalt.err (!%p66_p4)
}
   0xb   :  { %17 = dma.hbm_to_vmem [thread:$0]  %s112_s0, 256, %s15_s7, [#allocation3]  }
   0xc   :  { %90 = dma.done.wait [#allocation3], 256  }
   0xd   :  { %91 = vsyncadd [#allocation3], 4294967040  ;;  %v21_v0 = vld [vmem:[#allocation2] sm:$0xff]  ;;  %v22_v1 = vld [vmem:[#allocation2 + $0x8] sm:$0xff]  ;;  %s95_s11 = smov [#allocation5]  }
   0xe   :  { %v23_v2 = vmax.f32 %v21_v0, 3.8146973e-06  ;;  %v24_v3 = vmax.f32 %v22_v1, 3.8146973e-06  ;;  %s37_s12 = sshll.u32 %s95_s11, 4  ;;  %s38_s12 = int_to_ptr.vmem [resolvable:$true] %s37_s12 }
   0xf   :  { %s70_s13 = scalar_lea.vmem %s38_s12, 256  ;;  %p75_p6 = scmp.lt.s32.totalorder %s38_s12, %s38_s12 }
  0x10   :  { %v25_v4 = vmul.f32 %v23_v2, %v23_v2  ;;  %v26_v5 = vmul.f32 %v24_v3, %v24_v3  ;;  %p71_p5 = scmp.ne.s32.totalorder %s38_s12, %s70_s13  ;;  %p76_p7 = scmp.lt.s32.totalorder %s70_s13, %s70_s13 }
  0x12   :  { %v46_v6 = vadd.f32 -1.4551915e-11, %v25_v4  ;;  %v47_v7 = vadd.f32 -1.4551915e-11, %v26_v5  ;;  %p77_p8 = por %p76_p7, %p75_p6 }
  0x14   :  { %29 = vst [vmem:[#allocation5] sm:$0xff] %v46_v6  ;;  %30 = vst [vmem:[#allocation5 + $0x8] sm:$0xff] %v47_v7  ;;  %p78_p9 = pnand %p77_p8, %p71_p5 }
  0x16   :  { %81 = shalt.err (!%p78_p9)
}
  0x17   :  { %40 = dma.vmem_to_hbm [thread:$0]  %s38_s12, 256, %s113_s1, [#allocation4]  }
  0x18   :  { %92 = dma.done.wait [#allocation4], 256  }
  0x19   :  { %93 = vsyncadd [#allocation4], 4294967040 }
  0x1a   :  { %44 = vsyncpa [#allocation3], 1 }
  0x1b   :  { %45 = vsyncpa [#allocation4], 1 }

</bundles_post_ra>
